<compile_context>
chip_gen: v7x
topology: tpu7x:2x2x1
jax: 0.10.0
libtpu: 0.0.40
codegen_flags: <defaults>
</compile_context>

<pallas_src>
import functools

import jax
import jax.numpy as jnp
from jax.experimental import pallas as pl
from jax.experimental.pallas import tpu as pltpu


def _round_up(x, m):
    return (x + m - 1) // m * m


_ROW_TILE = 64  # rows per grid step for tall images (multiple of 8)


def _silog_grad_kernel(p_ref, p_top, p_bot, q_ref, q_top, q_bot,
                       out_ref, p_work, q_work, *,
                       tile_h, valid_h, mask_from_chunk):
    """One (batch, row-tile) block per grid step.

    p_*/q_*      : pred / ground-truth refs.
    *_ref        : (1, tile_h, w_pad) f32 row tile.
    *_top, *_bot : (1, 8, w_pad) 8-row blocks just above / below the tile.
    out_ref      : (1, 1, 2, 8, w_pad) partial [sum, sum-of-squares] slabs.
    p_work/q_work: (tile_h + 16, w_pad) VMEM scratch: [halo | tile | halo].
    """
    w_pad = p_ref.shape[2]
    t = pl.program_id(1)

    def grad_mag(x_ref, top_ref, bot_ref, work):
        # Assemble [top-halo | tile | bottom-halo] in scratch so the +-1-row
        # taps are plain shifted vector loads (no sublane rolls, no boundary
        # selects).  Only row 7 of the top halo / row 0 of the bottom halo
        # are actually consumed.
        x = x_ref[0]
        work[0:8, :] = top_ref[0]
        work[8:8 + tile_h, :] = x
        work[8 + tile_h:16 + tile_h, :] = bot_ref[0]
        up = work[7:7 + tile_h, :]           # x[i-1, j]
        dn = work[9:9 + tile_h, :]           # x[i+1, j]

        # Separable form of the fixed kernels:
        #   X = [[-3,.01,3],[-10,.01,10],[-3,.01,3]]
        #   Y = [[-3,-10,-3],[.01,.01,.01],[3,10,3]]
        s_ud = up + dn
        a = 3.0 * s_ud + 10.0 * x            # +-1 column stack of X
        bv = s_ud + x                        # centre column stack (x 0.01)
        d = dn - up                          # Y's antisymmetric row stack

        # Lane shifts (XLU): roll(v, s, 1)[:, j] == v[:, j - s]; the "+1
        # column" shift uses the non-negative equivalent w_pad - 1.
        xl = pltpu.roll(x, 1, 1)             # x[:, j-1]
        xr = pltpu.roll(x, w_pad - 1, 1)     # x[:, j+1]
        al = pltpu.roll(a, 1, 1)
        ar = pltpu.roll(a, w_pad - 1, 1)
        dl = pltpu.roll(d, 1, 1)
        dr = pltpu.roll(d, w_pad - 1, 1)

        gx = (ar - al) + 0.01 * bv
        gy = 3.0 * (dl + dr) + 10.0 * d + 0.01 * (xl + x + xr)
        return jnp.sqrt(gx * gx + gy * gy)

    g = jnp.abs(grad_mag(p_ref, p_top, p_bot, p_work)
                - grad_mag(q_ref, q_top, q_bot, q_work))

    n_chunks = tile_h // 8
    sub8 = jax.lax.broadcasted_iota(jnp.int32, (8, 1), 0)

    def chunk(k):
        c = g[k * 8:(k + 1) * 8, :]
        if k >= mask_from_chunk:
            # Only chunks that can reach global rows >= valid_h (zero-padding
            # rows plus the single wrap-contaminated last row) need a mask.
            ok = (t * tile_h + k * 8 + sub8) < valid_h
            c = jnp.where(ok, c, 0.0)
        return c

    # Fold rows into lane-dense (8, w_pad) partial slabs (pure VPU adds).
    c0 = chunk(0)
    acc_s = c0
    acc_q = c0 * c0
    for k in range(1, n_chunks):             # <= 16 iterations per tile
        c = chunk(k)
        acc_s = acc_s + c
        acc_q = acc_q + c * c
    out_ref[0, 0, 0, :, :] = acc_s
    out_ref[0, 0, 1, :, :] = acc_q


def _interp_matrix(n_out, n_in):
    """1-D linear interpolation matrix (n_out, n_in), align_corners=True."""
    pos = jnp.linspace(0.0, float(n_in - 1), n_out)
    lo_f = jnp.clip(jnp.floor(pos), 0.0, float(max(n_in - 2, 0)))
    w = (pos - lo_f).astype(jnp.float32)
    lo = lo_f.astype(jnp.int32)
    hi = jnp.minimum(lo + 1, n_in - 1)
    return (jax.nn.one_hot(lo, n_in, dtype=jnp.float32) * (1.0 - w)[:, None]
            + jax.nn.one_hot(hi, n_in, dtype=jnp.float32) * w[:, None])


def _bilinear_resize_align_corners(x, out_h, out_w):
    """F.interpolate(mode='bilinear', align_corners=True) as two matmuls."""
    _, _, h, w = x.shape
    x = x.astype(jnp.float32)
    if h != out_h:
        ry = _interp_matrix(out_h, h)                    # (out_h, h)
        x = jnp.einsum('oh,bchw->bcow', ry, x)
    if w != out_w:
        rx = _interp_matrix(out_w, w)                    # (out_w, w)
        x = jnp.einsum('vw,bchw->bchv', rx, x)
    return x


def silog_loss_grad(inp, target, mask=None, interpolate=True):
    """inp: (B,1,h,w), target: (B,1,H,W) -> scalar f32 (mask=None path)."""
    # TODO(synk): the boolean `mask` fancy-indexing (data-dependent
    # compaction) path of the PyTorch module is not implemented.
    assert mask is None, "mask path not implemented"
    B, C, H, W = target.shape
    assert C == 1, "the fixed 3x3 kernels are single-channel"

    pred4 = inp.astype(jnp.float32)
    if interpolate and pred4.shape[-2:] != (H, W):
        pred4 = _bilinear_resize_align_corners(pred4, H, W)
    pred = pred4.reshape(B, H, W)
    gt = target.astype(jnp.float32).reshape(B, H, W)

    # Pad with at least one extra zero row / column so the conv's zero border
    # (and the lane-roll wrap) always lands on padding, plus (8,128) alignment.
    h_pad8 = _round_up(H + 1, 8)
    if h_pad8 <= 2 * _ROW_TILE:
        tile_h, h_pad = h_pad8, h_pad8                   # single row tile
    else:
        tile_h, h_pad = _ROW_TILE, _round_up(H + 1, _ROW_TILE)
    w_pad = _round_up(W + 1, 128)
    n_tiles = h_pad // tile_h
    th8 = tile_h // 8
    n8 = h_pad // 8

    pad = ((0, 0), (0, h_pad - H), (0, w_pad - W))
    pred = jnp.pad(pred, pad)
    gt = jnp.pad(gt, pad)

    # First 8-row chunk (within a tile) that can touch global rows >= H.
    mask_from_chunk = max(0, (H - (n_tiles - 1) * tile_h) // 8)

    tile_spec = pl.BlockSpec((1, tile_h, w_pad), lambda b, t: (b, t, 0))
    # 8-row halo blocks just above / below the tile.  Indices wrap modulo the
    # padded height: for the first tile the top halo lands on zero padding
    # rows, for the last tile the bottom halo's contribution is masked out.
    top_spec = pl.BlockSpec(
        (1, 8, w_pad), lambda b, t: (b, (t * th8 + (n8 - 1)) % n8, 0))
    bot_spec = pl.BlockSpec(
        (1, 8, w_pad), lambda b, t: (b, ((t + 1) * th8) % n8, 0))

    kernel = functools.partial(
        _silog_grad_kernel, tile_h=tile_h, valid_h=H,
        mask_from_chunk=mask_from_chunk)

    parts = pl.pallas_call(
        kernel,
        out_shape=jax.ShapeDtypeStruct((B, n_tiles, 2, 8, w_pad), jnp.float32),
        grid=(B, n_tiles),
        in_specs=[tile_spec, top_spec, bot_spec,
                  tile_spec, top_spec, bot_spec],
        out_specs=pl.BlockSpec((1, 1, 2, 8, w_pad),
                               lambda b, t: (b, t, 0, 0, 0)),
        scratch_shapes=[pltpu.VMEM((tile_h + 16, w_pad), jnp.float32),
                        pltpu.VMEM((tile_h + 16, w_pad), jnp.float32)],
        compiler_params=pltpu.CompilerParams(
            dimension_semantics=("parallel", "parallel"),
            vmem_limit_bytes=48 * 1024 * 1024,
        ),
    )(pred, pred, pred, gt, gt, gt)

    # Tiny JAX epilogue: drop padded columns, reduce the partial slabs.
    n = float(B * H * W)
    s = jnp.sum(parts[:, :, 0, :, :W])
    ss = jnp.sum(parts[:, :, 1, :, :W])
    mean_g = s / n
    # TODO(synk): single-pass variance in f32 can cancel for very large pixel
    # counts; a second cheap centred pass would be more robust.
    var_g = jnp.maximum(ss - s * s / n, 0.0) / (n - 1.0)  # torch.var: unbiased
    dg = var_g + 0.15 * mean_g * mean_g
    return 10.0 * jnp.sqrt(dg)


if __name__ == "__main__":
    key = jax.random.PRNGKey(0)
    k1, k2 = jax.random.split(key)
    # Low-res prediction is bilinearly upsampled (align_corners) to target res.
    inp = jax.random.uniform(k1, (2, 1, 8, 8), jnp.float32, 0.1, 10.0)
    target = jax.random.uniform(k2, (2, 1, 16, 16), jnp.float32, 0.1, 10.0)

    loss = silog_loss_grad(inp, target, interpolate=True)
    jax.block_until_ready(loss)
    print("KERNEL_OK")
</pallas_src>

<mosaic_0001>
module attributes {stable_mosaic.version = 11 : i64} {
  func.func @_silog_grad_kernel(%arg0: i32, %arg1: i32, %arg2: memref<1x24x128xf32, #tpu.memory_space<vmem>>, %arg3: memref<1x8x128xf32, #tpu.memory_space<vmem>>, %arg4: memref<1x8x128xf32, #tpu.memory_space<vmem>>, %arg5: memref<1x24x128xf32, #tpu.memory_space<vmem>>, %arg6: memref<1x8x128xf32, #tpu.memory_space<vmem>>, %arg7: memref<1x8x128xf32, #tpu.memory_space<vmem>>, %arg8: memref<1x1x2x8x128xf32, #tpu.memory_space<vmem>>, %arg9: memref<40x128xf32, #tpu.memory_space<vmem>>, %arg10: memref<40x128xf32, #tpu.memory_space<vmem>>) attributes {dimension_semantics = [#tpu.dimension_semantics<parallel>, #tpu.dimension_semantics<parallel>], iteration_bounds = array<i64: 2, 1>, scalar_prefetch = 0 : i64, scratch_operands = 2 : i64, tpu.core_type = #tpu.core_type<tc>, window_params = [{transform_indices = @transform_0, window_bounds = array<i64: 1, 24, 128>}, {transform_indices = @transform_1, window_bounds = array<i64: 1, 8, 128>}, {transform_indices = @transform_2, window_bounds = array<i64: 1, 8, 128>}, {transform_indices = @transform_3, window_bounds = array<i64: 1, 24, 128>}, {transform_indices = @transform_4, window_bounds = array<i64: 1, 8, 128>}, {transform_indices = @transform_5, window_bounds = array<i64: 1, 8, 128>}, {transform_indices = @transform_6, window_bounds = array<i64: 1, 1, 2, 8, 128>}]} {
    %c0 = arith.constant 0 : index
    %c0_0 = arith.constant 0 : index
    %c0_1 = arith.constant 0 : index
    %0 = vector.load %arg2[%c0, %c0_0, %c0_1] : memref<1x24x128xf32, #tpu.memory_space<vmem>>, vector<1x24x128xf32>
    %1 = vector.shape_cast %0 : vector<1x24x128xf32> to vector<24x128xf32>
    %c0_2 = arith.constant 0 : index
    %c0_3 = arith.constant 0 : index
    %c0_4 = arith.constant 0 : index
    %2 = vector.load %arg3[%c0_2, %c0_3, %c0_4] : memref<1x8x128xf32, #tpu.memory_space<vmem>>, vector<1x8x128xf32>
    %3 = vector.shape_cast %2 : vector<1x8x128xf32> to vector<8x128xf32>
    %c0_5 = arith.constant 0 : index
    %c0_6 = arith.constant 0 : index
    %4 = vector.load %arg9[%c0_5, %c0_6] : memref<40x128xf32, #tpu.memory_space<vmem>>, vector<8x128xf32>
    tpu.vector_store %arg9[%c0_5, %c0_6], %3 {strides = array<i32>} : memref<40x128xf32, #tpu.memory_space<vmem>>, vector<8x128xf32>,
    %c8 = arith.constant 8 : index
    %c0_7 = arith.constant 0 : index
    %5 = vector.load %arg9[%c8, %c0_7] : memref<40x128xf32, #tpu.memory_space<vmem>>, vector<24x128xf32>
    tpu.vector_store %arg9[%c8, %c0_7], %1 {strides = array<i32>} : memref<40x128xf32, #tpu.memory_space<vmem>>, vector<24x128xf32>,
    %c0_8 = arith.constant 0 : index
    %c0_9 = arith.constant 0 : index
    %c0_10 = arith.constant 0 : index
    %6 = vector.load %arg4[%c0_8, %c0_9, %c0_10] : memref<1x8x128xf32, #tpu.memory_space<vmem>>, vector<1x8x128xf32>
    %7 = vector.shape_cast %6 : vector<1x8x128xf32> to vector<8x128xf32>
    %c32 = arith.constant 32 : index
    %c0_11 = arith.constant 0 : index
    %8 = vector.load %arg9[%c32, %c0_11] : memref<40x128xf32, #tpu.memory_space<vmem>>, vector<8x128xf32>
    tpu.vector_store %arg9[%c32, %c0_11], %7 {strides = array<i32>} : memref<40x128xf32, #tpu.memory_space<vmem>>, vector<8x128xf32>,
    %c7 = arith.constant 7 : index
    %c0_12 = arith.constant 0 : index
    %9 = vector.load %arg9[%c7, %c0_12] : memref<40x128xf32, #tpu.memory_space<vmem>>, vector<24x128xf32>
    %c9 = arith.constant 9 : index
    %c0_13 = arith.constant 0 : index
    %10 = vector.load %arg9[%c9, %c0_13] : memref<40x128xf32, #tpu.memory_space<vmem>>, vector<24x128xf32>
    %11 = arith.addf %9, %10 : vector<24x128xf32>
    %cst = arith.constant 3.000000e+00 : f32
    %12 = vector.broadcast %cst : f32 to vector<24x128xf32>
    %13 = arith.mulf %12, %11 : vector<24x128xf32>
    %cst_14 = arith.constant 1.000000e+01 : f32
    %14 = vector.broadcast %cst_14 : f32 to vector<24x128xf32>
    %15 = arith.mulf %14, %1 : vector<24x128xf32>
    %16 = arith.addf %13, %15 : vector<24x128xf32>
    %17 = arith.addf %11, %1 : vector<24x128xf32>
    %18 = arith.subf %10, %9 : vector<24x128xf32>
    %c1_i32 = arith.constant 1 : i32
    %19 = tpu.dynamic_rotate %1 by %c1_i32 dim 1 : vector<24x128xf32>, i32 -> vector<24x128xf32>
    %c127_i32 = arith.constant 127 : i32
    %20 = tpu.dynamic_rotate %1 by %c127_i32 dim 1 : vector<24x128xf32>, i32 -> vector<24x128xf32>
    %c1_i32_15 = arith.constant 1 : i32
    %21 = tpu.dynamic_rotate %16 by %c1_i32_15 dim 1 : vector<24x128xf32>, i32 -> vector<24x128xf32>
    %c127_i32_16 = arith.constant 127 : i32
    %22 = tpu.dynamic_rotate %16 by %c127_i32_16 dim 1 : vector<24x128xf32>, i32 -> vector<24x128xf32>
    %c1_i32_17 = arith.constant 1 : i32
    %23 = tpu.dynamic_rotate %18 by %c1_i32_17 dim 1 : vector<24x128xf32>, i32 -> vector<24x128xf32>
    %c127_i32_18 = arith.constant 127 : i32
    %24 = tpu.dynamic_rotate %18 by %c127_i32_18 dim 1 : vector<24x128xf32>, i32 -> vector<24x128xf32>
    %25 = arith.subf %22, %21 : vector<24x128xf32>
    %cst_19 = arith.constant 0.00999999977 : f32
    %26 = vector.broadcast %cst_19 : f32 to vector<24x128xf32>
    %27 = arith.mulf %26, %17 : vector<24x128xf32>
    %28 = arith.addf %25, %27 : vector<24x128xf32>
    %29 = arith.addf %23, %24 : vector<24x128xf32>
    %cst_20 = arith.constant 3.000000e+00 : f32
    %30 = vector.broadcast %cst_20 : f32 to vector<24x128xf32>
    %31 = arith.mulf %30, %29 : vector<24x128xf32>
    %cst_21 = arith.constant 1.000000e+01 : f32
    %32 = vector.broadcast %cst_21 : f32 to vector<24x128xf32>
    %33 = arith.mulf %32, %18 : vector<24x128xf32>
    %34 = arith.addf %31, %33 : vector<24x128xf32>
    %35 = arith.addf %19, %1 : vector<24x128xf32>
    %36 = arith.addf %35, %20 : vector<24x128xf32>
    %cst_22 = arith.constant 0.00999999977 : f32
    %37 = vector.broadcast %cst_22 : f32 to vector<24x128xf32>
    %38 = arith.mulf %37, %36 : vector<24x128xf32>
    %39 = arith.addf %34, %38 : vector<24x128xf32>
    %40 = arith.mulf %28, %28 : vector<24x128xf32>
    %41 = arith.mulf %39, %39 : vector<24x128xf32>
    %42 = arith.addf %40, %41 : vector<24x128xf32>
    %43 = math.sqrt %42 : vector<24x128xf32>
    %c0_23 = arith.constant 0 : index
    %c0_24 = arith.constant 0 : index
    %c0_25 = arith.constant 0 : index
    %44 = vector.load %arg5[%c0_23, %c0_24, %c0_25] : memref<1x24x128xf32, #tpu.memory_space<vmem>>, vector<1x24x128xf32>
    %45 = vector.shape_cast %44 : vector<1x24x128xf32> to vector<24x128xf32>
    %c0_26 = arith.constant 0 : index
    %c0_27 = arith.constant 0 : index
    %c0_28 = arith.constant 0 : index
    %46 = vector.load %arg6[%c0_26, %c0_27, %c0_28] : memref<1x8x128xf32, #tpu.memory_space<vmem>>, vector<1x8x128xf32>
    %47 = vector.shape_cast %46 : vector<1x8x128xf32> to vector<8x128xf32>
    %c0_29 = arith.constant 0 : index
    %c0_30 = arith.constant 0 : index
    %48 = vector.load %arg10[%c0_29, %c0_30] : memref<40x128xf32, #tpu.memory_space<vmem>>, vector<8x128xf32>
    tpu.vector_store %arg10[%c0_29, %c0_30], %47 {strides = array<i32>} : memref<40x128xf32, #tpu.memory_space<vmem>>, vector<8x128xf32>,
    %c8_31 = arith.constant 8 : index
    %c0_32 = arith.constant 0 : index
    %49 = vector.load %arg10[%c8_31, %c0_32] : memref<40x128xf32, #tpu.memory_space<vmem>>, vector<24x128xf32>
    tpu.vector_store %arg10[%c8_31, %c0_32], %45 {strides = array<i32>} : memref<40x128xf32, #tpu.memory_space<vmem>>, vector<24x128xf32>,
    %c0_33 = arith.constant 0 : index
    %c0_34 = arith.constant 0 : index
    %c0_35 = arith.constant 0 : index
    %50 = vector.load %arg7[%c0_33, %c0_34, %c0_35] : memref<1x8x128xf32, #tpu.memory_space<vmem>>, vector<1x8x128xf32>
    %51 = vector.shape_cast %50 : vector<1x8x128xf32> to vector<8x128xf32>
    %c32_36 = arith.constant 32 : index
    %c0_37 = arith.constant 0 : index
    %52 = vector.load %arg10[%c32_36, %c0_37] : memref<40x128xf32, #tpu.memory_space<vmem>>, vector<8x128xf32>
    tpu.vector_store %arg10[%c32_36, %c0_37], %51 {strides = array<i32>} : memref<40x128xf32, #tpu.memory_space<vmem>>, vector<8x128xf32>,
    %c7_38 = arith.constant 7 : index
    %c0_39 = arith.constant 0 : index
    %53 = vector.load %arg10[%c7_38, %c0_39] : memref<40x128xf32, #tpu.memory_space<vmem>>, vector<24x128xf32>
    %c9_40 = arith.constant 9 : index
    %c0_41 = arith.constant 0 : index
    %54 = vector.load %arg10[%c9_40, %c0_41] : memref<40x128xf32, #tpu.memory_space<vmem>>, vector<24x128xf32>
    %55 = arith.addf %53, %54 : vector<24x128xf32>
    %cst_42 = arith.constant 3.000000e+00 : f32
    %56 = vector.broadcast %cst_42 : f32 to vector<24x128xf32>
    %57 = arith.mulf %56, %55 : vector<24x128xf32>
    %cst_43 = arith.constant 1.000000e+01 : f32
    %58 = vector.broadcast %cst_43 : f32 to vector<24x128xf32>
    %59 = arith.mulf %58, %45 : vector<24x128xf32>
    %60 = arith.addf %57, %59 : vector<24x128xf32>
    %61 = arith.addf %55, %45 : vector<24x128xf32>
    %62 = arith.subf %54, %53 : vector<24x128xf32>
    %c1_i32_44 = arith.constant 1 : i32
    %63 = tpu.dynamic_rotate %45 by %c1_i32_44 dim 1 : vector<24x128xf32>, i32 -> vector<24x128xf32>
    %c127_i32_45 = arith.constant 127 : i32
    %64 = tpu.dynamic_rotate %45 by %c127_i32_45 dim 1 : vector<24x128xf32>, i32 -> vector<24x128xf32>
    %c1_i32_46 = arith.constant 1 : i32
    %65 = tpu.dynamic_rotate %60 by %c1_i32_46 dim 1 : vector<24x128xf32>, i32 -> vector<24x128xf32>
    %c127_i32_47 = arith.constant 127 : i32
    %66 = tpu.dynamic_rotate %60 by %c127_i32_47 dim 1 : vector<24x128xf32>, i32 -> vector<24x128xf32>
    %c1_i32_48 = arith.constant 1 : i32
    %67 = tpu.dynamic_rotate %62 by %c1_i32_48 dim 1 : vector<24x128xf32>, i32 -> vector<24x128xf32>
    %c127_i32_49 = arith.constant 127 : i32
    %68 = tpu.dynamic_rotate %62 by %c127_i32_49 dim 1 : vector<24x128xf32>, i32 -> vector<24x128xf32>
    %69 = arith.subf %66, %65 : vector<24x128xf32>
    %cst_50 = arith.constant 0.00999999977 : f32
    %70 = vector.broadcast %cst_50 : f32 to vector<24x128xf32>
    %71 = arith.mulf %70, %61 : vector<24x128xf32>
    %72 = arith.addf %69, %71 : vector<24x128xf32>
    %73 = arith.addf %67, %68 : vector<24x128xf32>
    %cst_51 = arith.constant 3.000000e+00 : f32
    %74 = vector.broadcast %cst_51 : f32 to vector<24x128xf32>
    %75 = arith.mulf %74, %73 : vector<24x128xf32>
    %cst_52 = arith.constant 1.000000e+01 : f32
    %76 = vector.broadcast %cst_52 : f32 to vector<24x128xf32>
    %77 = arith.mulf %76, %62 : vector<24x128xf32>
    %78 = arith.addf %75, %77 : vector<24x128xf32>
    %79 = arith.addf %63, %45 : vector<24x128xf32>
    %80 = arith.addf %79, %64 : vector<24x128xf32>
    %cst_53 = arith.constant 0.00999999977 : f32
    %81 = vector.broadcast %cst_53 : f32 to vector<24x128xf32>
    %82 = arith.mulf %81, %80 : vector<24x128xf32>
    %83 = arith.addf %78, %82 : vector<24x128xf32>
    %84 = arith.mulf %72, %72 : vector<24x128xf32>
    %85 = arith.mulf %83, %83 : vector<24x128xf32>
    %86 = arith.addf %84, %85 : vector<24x128xf32>
    %87 = math.sqrt %86 : vector<24x128xf32>
    %88 = arith.subf %43, %87 : vector<24x128xf32>
    %89 = math.absf %88 : vector<24x128xf32>
    %90 = tpu.iota {dimensions = array<i32: 0>} : vector<8x1xi32>
    %91 = vector.extract_strided_slice %89 {offsets = [0, 0], sizes = [8, 128], strides = [1, 1]} : vector<24x128xf32> to vector<8x128xf32>
    %92 = arith.mulf %91, %91 : vector<8x128xf32>
    %93 = vector.extract_strided_slice %89 {offsets = [8, 0], sizes = [8, 128], strides = [1, 1]} : vector<24x128xf32> to vector<8x128xf32>
    %94 = arith.addf %91, %93 : vector<8x128xf32>
    %95 = arith.mulf %93, %93 : vector<8x128xf32>
    %96 = arith.addf %92, %95 : vector<8x128xf32>
    %97 = vector.extract_strided_slice %89 {offsets = [16, 0], sizes = [8, 128], strides = [1, 1]} : vector<24x128xf32> to vector<8x128xf32>
    %c24_i32 = arith.constant 24 : i32
    %98 = arith.muli %arg1, %c24_i32 : i32
    %c16_i32 = arith.constant 16 : i32
    %99 = arith.addi %98, %c16_i32 : i32
    %100 = vector.broadcast %99 : i32 to vector<8x1xi32>
    %101 = arith.addi %100, %90 : vector<8x1xi32>
    %c16_i32_54 = arith.constant 16 : i32
    %102 = vector.broadcast %c16_i32_54 : i32 to vector<8x1xi32>
    %103 = arith.cmpi slt, %101, %102 : vector<8x1xi32>
    %cst_55 = arith.constant 0.000000e+00 : f32
    %104 = vector.shape_cast %103 : vector<8x1xi1> to vector<8x1xi1>
    %105 = vector.broadcast %104 : vector<8x1xi1> to vector<8x128xi1>
    %106 = vector.broadcast %cst_55 : f32 to vector<8x128xf32>
    %107 = arith.select %105, %97, %106 : vector<8x128xi1>, vector<8x128xf32>
    %108 = arith.addf %94, %107 : vector<8x128xf32>
    %109 = arith.mulf %107, %107 : vector<8x128xf32>
    %110 = arith.addf %96, %109 : vector<8x128xf32>
    %c0_56 = arith.constant 0 : index
    %c0_57 = arith.constant 0 : index
    %c0_58 = arith.constant 0 : index
    %c0_59 = arith.constant 0 : index
    %c0_60 = arith.constant 0 : index
    %111 = vector.load %arg8[%c0_56, %c0_57, %c0_58, %c0_59, %c0_60] : memref<1x1x2x8x128xf32, #tpu.memory_space<vmem>>, vector<1x1x1x8x128xf32>
    %112 = vector.shape_cast %111 : vector<1x1x1x8x128xf32> to vector<8x128xf32>
    %113 = vector.shape_cast %108 : vector<8x128xf32> to vector<1x1x1x8x128xf32>
    tpu.vector_store %arg8[%c0_56, %c0_57, %c0_58, %c0_59, %c0_60], %113 {strides = array<i32>} : memref<1x1x2x8x128xf32, #tpu.memory_space<vmem>>, vector<1x1x1x8x128xf32>,
    %c0_61 = arith.constant 0 : index
    %c0_62 = arith.constant 0 : index
    %c1 = arith.constant 1 : index
    %c0_63 = arith.constant 0 : index
    %c0_64 = arith.constant 0 : index
    %114 = vector.load %arg8[%c0_61, %c0_62, %c1, %c0_63, %c0_64] : memref<1x1x2x8x128xf32, #tpu.memory_space<vmem>>, vector<1x1x1x8x128xf32>
    %115 = vector.shape_cast %114 : vector<1x1x1x8x128xf32> to vector<8x128xf32>
    %116 = vector.shape_cast %110 : vector<8x128xf32> to vector<1x1x1x8x128xf32>
    tpu.vector_store %arg8[%c0_61, %c0_62, %c1, %c0_63, %c0_64], %116 {strides = array<i32>} : memref<1x1x2x8x128xf32, #tpu.memory_space<vmem>>, vector<1x1x1x8x128xf32>,
    return
  }
  func.func @transform_0(%arg0: i32, %arg1: i32) -> (i32, i32, i32) {
    %c0_i32 = arith.constant 0 : i32
    %c0_i32_0 = arith.constant 0 : i32
    return %arg0, %arg1, %c0_i32 : i32, i32, i32
  }
  func.func @transform_1(%arg0: i32, %arg1: i32) -> (i32, i32, i32) {
    %c3_i32 = arith.constant 3 : i32
    %0 = arith.muli %arg1, %c3_i32 : i32
    %c2_i32 = arith.constant 2 : i32
    %1 = arith.addi %0, %c2_i32 : i32
    %c3_i32_0 = arith.constant 3 : i32
    %c0_i32 = arith.constant 0 : i32
    %2 = arith.cmpi eq, %c3_i32_0, %c0_i32 : i32
    %c1_i32 = arith.constant 1 : i32
    %3 = arith.select %2, %c1_i32, %c3_i32_0 : i32
    %4 = arith.remsi %1, %3 : i32
    %c0_i32_1 = arith.constant 0 : i32
    %5 = arith.cmpi ne, %4, %c0_i32_1 : i32
    %c0_i32_2 = arith.constant 0 : i32
    %6 = arith.cmpi slt, %4, %c0_i32_2 : i32
    %c0_i32_3 = arith.constant 0 : i32
    %7 = arith.cmpi slt, %3, %c0_i32_3 : i32
    %8 = arith.xori %6, %7 : i1
    %9 = arith.andi %8, %5 : i1
    %10 = arith.addi %4, %3 : i32
    %11 = arith.select %9, %10, %4 : i32
    %c0_i32_4 = arith.constant 0 : i32
    %c0_i32_5 = arith.constant 0 : i32
    return %arg0, %11, %c0_i32_4 : i32, i32, i32
  }
  func.func @transform_2(%arg0: i32, %arg1: i32) -> (i32, i32, i32) {
    %c1_i32 = arith.constant 1 : i32
    %0 = arith.addi %arg1, %c1_i32 : i32
    %c3_i32 = arith.constant 3 : i32
    %1 = arith.muli %0, %c3_i32 : i32
    %c3_i32_0 = arith.constant 3 : i32
    %c0_i32 = arith.constant 0 : i32
    %2 = arith.cmpi eq, %c3_i32_0, %c0_i32 : i32
    %c1_i32_1 = arith.constant 1 : i32
    %3 = arith.select %2, %c1_i32_1, %c3_i32_0 : i32
    %4 = arith.remsi %1, %3 : i32
    %c0_i32_2 = arith.constant 0 : i32
    %5 = arith.cmpi ne, %4, %c0_i32_2 : i32
    %c0_i32_3 = arith.constant 0 : i32
    %6 = arith.cmpi slt, %4, %c0_i32_3 : i32
    %c0_i32_4 = arith.constant 0 : i32
    %7 = arith.cmpi slt, %3, %c0_i32_4 : i32
    %8 = arith.xori %6, %7 : i1
    %9 = arith.andi %8, %5 : i1
    %10 = arith.addi %4, %3 : i32
    %11 = arith.select %9, %10, %4 : i32
    %c0_i32_5 = arith.constant 0 : i32
    %c0_i32_6 = arith.constant 0 : i32
    return %arg0, %11, %c0_i32_5 : i32, i32, i32
  }
  func.func @transform_3(%arg0: i32, %arg1: i32) -> (i32, i32, i32) {
    %c0_i32 = arith.constant 0 : i32
    %c0_i32_0 = arith.constant 0 : i32
    return %arg0, %arg1, %c0_i32 : i32, i32, i32
  }
  func.func @transform_4(%arg0: i32, %arg1: i32) -> (i32, i32, i32) {
    %c3_i32 = arith.constant 3 : i32
    %0 = arith.muli %arg1, %c3_i32 : i32
    %c2_i32 = arith.constant 2 : i32
    %1 = arith.addi %0, %c2_i32 : i32
    %c3_i32_0 = arith.constant 3 : i32
    %c0_i32 = arith.constant 0 : i32
    %2 = arith.cmpi eq, %c3_i32_0, %c0_i32 : i32
    %c1_i32 = arith.constant 1 : i32
    %3 = arith.select %2, %c1_i32, %c3_i32_0 : i32
    %4 = arith.remsi %1, %3 : i32
    %c0_i32_1 = arith.constant 0 : i32
    %5 = arith.cmpi ne, %4, %c0_i32_1 : i32
    %c0_i32_2 = arith.constant 0 : i32
    %6 = arith.cmpi slt, %4, %c0_i32_2 : i32
    %c0_i32_3 = arith.constant 0 : i32
    %7 = arith.cmpi slt, %3, %c0_i32_3 : i32
    %8 = arith.xori %6, %7 : i1
    %9 = arith.andi %8, %5 : i1
    %10 = arith.addi %4, %3 : i32
    %11 = arith.select %9, %10, %4 : i32
    %c0_i32_4 = arith.constant 0 : i32
    %c0_i32_5 = arith.constant 0 : i32
    return %arg0, %11, %c0_i32_4 : i32, i32, i32
  }
  func.func @transform_5(%arg0: i32, %arg1: i32) -> (i32, i32, i32) {
    %c1_i32 = arith.constant 1 : i32
    %0 = arith.addi %arg1, %c1_i32 : i32
    %c3_i32 = arith.constant 3 : i32
    %1 = arith.muli %0, %c3_i32 : i32
    %c3_i32_0 = arith.constant 3 : i32
    %c0_i32 = arith.constant 0 : i32
    %2 = arith.cmpi eq, %c3_i32_0, %c0_i32 : i32
    %c1_i32_1 = arith.constant 1 : i32
    %3 = arith.select %2, %c1_i32_1, %c3_i32_0 : i32
    %4 = arith.remsi %1, %3 : i32
    %c0_i32_2 = arith.constant 0 : i32
    %5 = arith.cmpi ne, %4, %c0_i32_2 : i32
    %c0_i32_3 = arith.constant 0 : i32
    %6 = arith.cmpi slt, %4, %c0_i32_3 : i32
    %c0_i32_4 = arith.constant 0 : i32
    %7 = arith.cmpi slt, %3, %c0_i32_4 : i32
    %8 = arith.xori %6, %7 : i1
    %9 = arith.andi %8, %5 : i1
    %10 = arith.addi %4, %3 : i32
    %11 = arith.select %9, %10, %4 : i32
    %c0_i32_5 = arith.constant 0 : i32
    %c0_i32_6 = arith.constant 0 : i32
    return %arg0, %11, %c0_i32_5 : i32, i32, i32
  }
  func.func @transform_6(%arg0: i32, %arg1: i32) -> (i32, i32, i32, i32, i32) {
    %c0_i32 = arith.constant 0 : i32
    %c0_i32_0 = arith.constant 0 : i32
    %c0_i32_1 = arith.constant 0 : i32
    %c0_i32_2 = arith.constant 0 : i32
    return %arg0, %arg1, %c0_i32, %c0_i32_0, %c0_i32_1 : i32, i32, i32, i32, i32
  }
}

</mosaic_0001>

<bundles_post_ra>
// kernel: tpu_custom_call.1
= control target key start
LH: loop header
LB: loop body
LE: loop exit
PB: predicated region body
PF: predicated region fallthrough
CT: control target
= control target key end

     0   :  { %s2165_s0 = inlined_call_operand.hbm [shape: f32[2,24,128], index: 0, kind: input, shape index: {}]   ;;  %s2166_s1 = inlined_call_operand.hbm [shape: f32[2,24,128], index: 1, kind: input, shape index: {}]   ;;  %s2167_s2 = inlined_call_operand.hbm [shape: f32[2,24,128], index: 2, kind: input, shape index: {}]   ;;  %s2168_s3 = inlined_call_operand.hbm [shape: f32[2,24,128], index: 3, kind: input, shape index: {}]   ;;  %s2169_s4 = inlined_call_operand.hbm [shape: f32[2,24,128], index: 4, kind: input, shape index: {}]   ;;  %s2170_s5 = inlined_call_operand.hbm [shape: f32[2,24,128], index: 5, kind: input, shape index: {}]   ;;  %s2171_s6 = inlined_call_operand.hbm [shape: f32[2,1,2,8,128], index: 6, kind: output, shape index: {}]  }
   0x1   :  { %2185 = sst [smem:[#allocation27_spill]] %s2165_s0 }
   0x2   :  { %2186 = sst [smem:[#allocation28_spill]] %s2166_s1 }
   0x3   :  { %2187 = sst [smem:[#allocation29_spill]] %s2168_s3 }
   0x4   :  { %2188 = sst [smem:[#allocation30_spill]] %s2171_s6 }
   0x5   :  { %11 = vsyncpa [#allocation5], 0 }
   0x6   :  { %13 = vsyncpa [#allocation5 + $0x1], 0 }
   0x7   :  { %14 = vsyncpa [#allocation8], 0 }
   0x8   :  { %16 = vsyncpa [#allocation8 + $0x1], 0 }
   0x9   :  { %17 = vsyncpa [#allocation11], 0 }
   0xa   :  { %19 = vsyncpa [#allocation11 + $0x1], 0 }
   0xb   :  { %20 = vsyncpa [#allocation14], 0 }
   0xc   :  { %22 = vsyncpa [#allocation14 + $0x1], 0 }
   0xd   :  { %23 = vsyncpa [#allocation6], 0 }
   0xe   :  { %25 = vsyncpa [#allocation6 + $0x1], 0  ;;  %s1714_s21 = smov 0   ;;  %s1716_s22 = smov 0  }
   0xf   :  { %s1718_s23 = smov 0   ;;  %s1720_s24 = smov 0  }
  0x10   :  { %s1722_s25 = smov 0   ;;  %s1724_s26 = smov 0  }
  0x11 LB: > { %2189 = sst [smem:[#allocation21_spill]] %s1644_s21  ;;  %s1745_s27 = sadd.s32 4294967295, %s1664_s26   ;;  %s1664_s26 = sphi %s1724_s26, %s31_s26   ;;  %s1660_s25 = sphi %s1722_s25, %s2222_s25   ;;  %s1656_s24 = sphi %s1720_s24, %s2221_s24   ;;  %s1652_s23 = sphi %s1718_s23, %s2220_s23   ;;  %s1648_s22 = sphi %s1716_s22, %s2224_s22   ;;  %s1644_s21 = sphi %s1714_s21, %s2223_s21  }
  0x12   : > { %2190 = sst [smem:[#allocation22_spill]] %s1652_s23  ;;  %s1248_s28 = sadd.s32 4294967294, %s1664_s26  }
  0x13   : > { %2191 = sst [smem:[#allocation23_spill]] %s1660_s25  ;;  %s43_s29 = sadd.s32 1, %s1660_s25 }
  0x14   : > { %s52_s30 = sadd.s32 1, %s1652_s23  ;;  %p45_p0 = scmp.ge.s32.totalorder %s43_s29, 2 }
  0x15   : > { %p59_p1 = scmp.ne.s32.totalorder %s1652_s23, %s1648_s22  ;;  %p60_p2 = scmp.eq.s32.totalorder %s1664_s26, 0 }
  0x16   : > { %p65_p3 = scmp.ne.s32.totalorder %s1648_s22, %s1644_s21  ;;  %s2226_s29 = smov (%p45_p0, %s43_s29), 0 }
  0x17   : > { %2192 = sst [smem:[#allocation24_spill]] %s2226_s29  ;;  %p1757_p4 = por %p60_p2, %p59_p1 }
  0x18   : > { %p66_p5 = scmp.eq.s32.totalorder %s1745_s27, 0  ;;  %s47_s8 = ssub.s32 %s1660_s25, %s2226_s29 }
  0x19   : > { %p351_p6 = scmp.eq.s32.totalorder %s1745_s27, 1  ;;  %p50_p7 = scmp.eq.s32.totalorder %s47_s8, 0 }
  0x1a   : > { %p1765_p8 = por %p66_p5, %p65_p3  ;;  %p357_p10 = scmp.eq.s32.totalorder %s1248_s28, 1 }
  0x1b   : > { %p1769_p9 = por %p351_p6, %p59_p1  ;;  %p1324_p13 = scmp.lt.s32.totalorder %s1664_s26, 2 }
  0x1c   : > { %s2194_s9 = scalar_select %p1765_p8, 1, 0 }
  0x1d   : > { %s2195_s10 = scalar_select %p1769_p9, 1, 0 }
  0x1e   : > { %s1774_s11 = scalar_select %p50_p7, %s1652_s23, %s52_s30  }
  0x1f   : > { %p1776_p11 = por %p357_p10, %p65_p3  ;;  %s1783_s13 = sand.u32 1, %s1652_s23  }
  0x20   : > { %2196 = sst [smem:[#allocation25_spill]] %s1774_s11  ;;  %s1786_s14 = smul.u32 384, %s1660_s25 }
  0x21   : > { %s2197_s12 = scalar_select %p1776_p11, 1, 0 }
  0x22   : > { %s2175_s15 = sand.u32 1, %s1664_s26   ;;  %p1791_p0 = pnand %p1324_p13, %p1757_p4 }
  0x23   : > { %2198 = sst [smem:[#allocation26_spill]] %s2197_s12  ;;  %s1796_s17 = sshll.u32 %s1783_s13, 3 }
  0x24   : > { %s2199_s16 = scalar_select %p1791_p0, 1, 0 }
  0x25   : > { %s2173_s18 = sadd.s32 256, %s1786_s14  ;;  %s404_s19 = scalar_lea.vmem [#allocation7], %s1796_s17 }
  0x26   : > { %s428_s20 = sshll.u32 %s404_s19, 4  ;;  %s2200_s1 = sld [smem:[#allocation28_spill]]  ;;  %s1807_s20 = int_to_ptr.vmem [resolvable:$true] %s428_s20 }
  0x27   : > { %s1811_s7 = scalar_lea.sflag [#allocation8], %s2175_s15  ;;  %p1817_p2 = pneg %p1791_p0 }
  0x2c   : > { %s1805_s8 = scalar_lea.hbm %s2200_s1, %s2173_s18  ;;  %s1395_s18 = scalar_lea.hbm %s2200_s1, 768 }
  0x2d   : > { %s1390_s29 = scalar_lea.hbm %s1805_s8, 128  ;;  %p1396_p5 = scmp.lt.u32.totalorder %s1805_s8, %s2200_s1 }
  0x2e   : > { %p1391_p1 = scmp.ne.s32.totalorder %s1805_s8, %s1390_s29  ;;  %p1397_p6 = scmp.lt.u32.totalorder %s1395_s18, %s1390_s29 }
  0x2f   : > { %p1399_p10 = scmp.lt.u32.totalorder %s1390_s29, %s1805_s8 }
  0x30   : > { %p1393_p3 = pnand %p1817_p2, %p1391_p1  ;;  %p1398_p7 = por %p1397_p6, %p1396_p5 }
  0x32   : > { %p1394_p4 = pneg %p1393_p3  ;;  %p1400_p13 = por %p1399_p10, %p1398_p7 }
  0x34   : > { %p1401_p12 = pnand %p1400_p13, %p1394_p4 }
  0x36   : > { %1404 = shalt.err (!%p1401_p12)
}
  0x37   : > { %s1405_s15 = scalar_lea.vmem %s1807_s20, 128  ;;  %s1666_s28 = smov [#allocation7]  }
  0x38   : > { %p1406_p1 = scmp.ne.s32.totalorder %s1807_s20, %s1405_s15  ;;  %s1410_s30 = sshll.u32 %s1666_s28, 4  ;;  %s1411_s30 = int_to_ptr.vmem [resolvable:$false] %s1410_s30 }
  0x39   : > { %s1412_s25 = scalar_lea.vmem %s1411_s30, 256  ;;  %p1413_p9 = scmp.lt.s32.totalorder %s1807_s20, %s1411_s30 }
  0x3a   : > { %p1408_p3 = pnand %p1406_p1, %p1817_p2  ;;  %p1414_p8 = scmp.lt.s32.totalorder %s1412_s25, %s1405_s15 }
  0x3c   : > { %p1409_p11 = pneg %p1408_p3  ;;  %p1415_p5 = por %p1414_p8, %p1413_p9 }
  0x3e   : > { %p1416_p6 = pnand %p1415_p5, %p1409_p11 }
  0x40   : > { %1419 = shalt.err (!%p1416_p6)
}
  0x41   : > { %1307 = dma.hbm_to_vmem [thread:$0]  (!%p1791_p0), %s1805_s8, 128, %s1807_s20, %s1811_s7  }
  0x42   : > { %s2202_s29 = sadd.s32 256, %s1786_s14  ;;  %p1261_p8 = scmp.ge.s32.totalorder %s1664_s26, 1 }
  0x43   : > { %s1846_s18 = scalar_lea.hbm %s2169_s4, %s2202_s29  ;;  %p561_p9 = scmp.lt.s32.totalorder %s1664_s26, 3 }
  0x44   : > { %s1278_s28 = smul.u32 24, %s1783_s13  ;;  %s2204_s3 = sld [smem:[#allocation29_spill]] }
  0x45   : > { %p1851_p11 = pnand %p1261_p8, %p561_p9  ;;  %s2205_s29 = sand.u32 1, %s1664_s26  }
  0x46   : > { %s474_s20 = scalar_lea.vmem [#allocation10], %s1278_s28  ;;  %s1867_s11 = scalar_lea.sflag [#allocation11], %s2205_s29 }
  0x47   : > { %s2203_s30 = scalar_select %p1851_p11, 1, 0 }
  0x48   : > { %s483_s8 = sshll.u32 %s474_s20, 4  ;;  %s1863_s8 = int_to_ptr.vmem [resolvable:$true] %s483_s8 }
  0x4a   : > { %s1859_s23 = scalar_lea.hbm %s2204_s3, %s1786_s14  ;;  %s1425_s12 = scalar_lea.hbm %s2204_s3, 768 }
  0x4b   : > { %s1420_s15 = scalar_lea.hbm %s1859_s23, 384  ;;  %p1426_p10 = scmp.lt.u32.totalorder %s1859_s23, %s2204_s3 }
  0x4c   : > { %p1421_p12 = scmp.ne.s32.totalorder %s1859_s23, %s1420_s15  ;;  %p1427_p13 = scmp.lt.u32.totalorder %s1425_s12, %s1420_s15 }
  0x4d   : > { %p1429_p3 = scmp.lt.u32.totalorder %s1420_s15, %s1859_s23 }
  0x4e   : > { %p1423_p4 = pnand %p1421_p12, %p1817_p2  ;;  %p1428_p1 = por %p1427_p13, %p1426_p10 }
  0x50   : > { %p1424_p7 = pneg %p1423_p4  ;;  %p1430_p5 = por %p1429_p3, %p1428_p1 }
  0x52   : > { %p1431_p6 = pnand %p1430_p5, %p1424_p7 }
  0x54   : > { %1434 = shalt.err (!%p1431_p6)
}
  0x55   : > { %s1435_s20 = scalar_lea.vmem %s1863_s8, 384  ;;  %s1667_s29 = smov [#allocation10]  }
  0x56   : > { %p1436_p8 = scmp.ne.s32.totalorder %s1863_s8, %s1435_s20  ;;  %s1440_s1 = sshll.u32 %s1667_s29, 4  ;;  %s1441_s1 = int_to_ptr.vmem [resolvable:$false] %s1440_s1 }
  0x57   : > { %s1442_s6 = scalar_lea.vmem %s1441_s1, 768  ;;  %p1443_p4 = scmp.lt.s32.totalorder %s1863_s8, %s1441_s1 }
  0x58   : > { %p1438_p9 = pnand %p1436_p8, %p1817_p2  ;;  %p1444_p11 = scmp.lt.s32.totalorder %s1442_s6, %s1435_s20 }
  0x5a   : > { %p1439_p12 = pneg %p1438_p9  ;;  %p1445_p10 = por %p1444_p11, %p1443_p4 }
  0x5c   : > { %p1446_p13 = pnand %p1445_p10, %p1439_p12 }
  0x5e   : > { %1449 = shalt.err (!%p1446_p13)
}
  0x5f   : > { %s2182_s21 = smov 128   ;;  %s1669_s12 = smov 8  }
  0x60   : > { %1313 = dma.hbm_to_vmem [thread:$0]  (!%p1791_p0), %s1859_s23, 384, %s1863_s8, %s1867_s11, %s2182_s21, %s2182_s21, %s1669_s12  }
  0x61   : > { %s2206_s0 = sld [smem:[#allocation27_spill]]  ;;  %s381_s29 = scalar_lea.vmem [#allocation4], %s1278_s28 }
  0x62   : > { %s390_s1 = sshll.u32 %s381_s29, 4  ;;  %s378_s6 = scalar_lea.sflag [#allocation5], %s1783_s13  ;;  %s1902_s1 = int_to_ptr.vmem [resolvable:$true] %s390_s1 }
  0x67   : > { %s1898_s20 = scalar_lea.hbm %s2206_s0, %s1786_s14  ;;  %s1455_s15 = scalar_lea.hbm %s2206_s0, 768 }
  0x68   : > { %s1450_s3 = scalar_lea.hbm %s1898_s20, 384  ;;  %p1456_p3 = scmp.lt.u32.totalorder %s1898_s20, %s2206_s0 }
  0x69   : > { %p1451_p11 = scmp.ne.s32.totalorder %s1898_s20, %s1450_s3  ;;  %p1457_p5 = scmp.lt.u32.totalorder %s1455_s15, %s1450_s3 }
  0x6a   : > { %p1459_p8 = scmp.lt.u32.totalorder %s1450_s3, %s1898_s20 }
  0x6b   : > { %p1453_p7 = pnand %p1451_p11, %p1817_p2  ;;  %p1458_p6 = por %p1457_p5, %p1456_p3 }
  0x6d   : > { %p1454_p1 = pneg %p1453_p7  ;;  %p1460_p9 = por %p1459_p8, %p1458_p6 }
  0x6f   : > { %p1461_p12 = pnand %p1460_p9, %p1454_p1 }
  0x71   : > { %1464 = shalt.err (!%p1461_p12)
}
  0x72   : > { %s1465_s28 = scalar_lea.vmem %s1902_s1, 384  ;;  %s1670_s29 = smov [#allocation4]  }
  0x73   : > { %p1466_p4 = scmp.ne.s32.totalorder %s1902_s1, %s1465_s28  ;;  %s1470_s23 = sshll.u32 %s1670_s29, 4  ;;  %s1471_s23 = int_to_ptr.vmem [resolvable:$false] %s1470_s23 }
  0x74   : > { %s1472_s21 = scalar_lea.vmem %s1471_s23, 768  ;;  %p1473_p11 = scmp.lt.s32.totalorder %s1902_s1, %s1471_s23 }
  0x75   : > { %p1468_p10 = pnand %p1466_p4, %p1817_p2  ;;  %p1474_p7 = scmp.lt.s32.totalorder %s1472_s21, %s1465_s28 }
  0x77   : > { %p1469_p13 = pneg %p1468_p10  ;;  %p1475_p3 = por %p1474_p7, %p1473_p11 }
  0x79   : > { %p1476_p5 = pnand %p1475_p3, %p1469_p13 }
  0x7b   : > { %1479 = shalt.err (!%p1476_p5)
}
  0x7c   : > { %s2207_s3 = smov 128   ;;  %s1935_s25 = scalar_lea.hbm %s2167_s2, %s1786_s14 }
  0x7d   : > { %1304 = dma.hbm_to_vmem [thread:$0]  (!%p1791_p0), %s1898_s20, 384, %s1902_s1, %s378_s6, %s2207_s3, %s2207_s3, %s1669_s12  }
  0x7e   : > { %s439_s28 = scalar_lea.vmem [#allocation9], %s1796_s17  ;;  %s1480_s23 = scalar_lea.hbm %s1935_s25, 128 }
  0x7f   : > { %s463_s29 = sshll.u32 %s439_s28, 4  ;;  %p1481_p1 = scmp.ne.s32.totalorder %s1935_s25, %s1480_s23  ;;  %s464_s29 = int_to_ptr.vmem [resolvable:$true] %s463_s29 }
  0x80   : > { %s1485_s12 = scalar_lea.hbm %s2167_s2, 768  ;;  %p1486_p9 = scmp.lt.u32.totalorder %s1935_s25, %s2167_s2 }
  0x81   : > { %p1483_p6 = pnand %p1481_p1, %p1817_p2  ;;  %p1487_p12 = scmp.lt.u32.totalorder %s1485_s12, %s1480_s23 }
  0x82   : > { %p1489_p10 = scmp.lt.u32.totalorder %s1480_s23, %s1935_s25 }
  0x83   : > { %p1484_p8 = pneg %p1483_p6  ;;  %p1488_p4 = por %p1487_p12, %p1486_p9 }
  0x85   : > { %p1490_p13 = por %p1489_p10, %p1488_p4 }
  0x87   : > { %p1491_p11 = pnand %p1490_p13, %p1484_p8 }
  0x89   : > { %1494 = shalt.err (!%p1491_p11)
}
  0x8a   : > { %s1495_s6 = scalar_lea.vmem %s464_s29, 128  ;;  %s1671_s3 = smov [#allocation9]  }
  0x8b   : > { %p1496_p7 = scmp.ne.s32.totalorder %s464_s29, %s1495_s6  ;;  %s1500_s8 = sshll.u32 %s1671_s3, 4  ;;  %s1501_s8 = int_to_ptr.vmem [resolvable:$false] %s1500_s8 }
  0x8c   : > { %s1502_s0 = scalar_lea.vmem %s1501_s8, 256  ;;  %p1503_p1 = scmp.lt.s32.totalorder %s464_s29, %s1501_s8 }
  0x8d   : > { %p1498_p3 = pnand %p1496_p7, %p1817_p2  ;;  %p1504_p6 = scmp.lt.s32.totalorder %s1502_s0, %s1495_s6 }
  0x8f   : > { %p1499_p5 = pneg %p1498_p3  ;;  %p1505_p0 = por %p1504_p6, %p1503_p1 }
  0x91   : > { %p1506_p9 = pnand %p1505_p0, %p1499_p5 }
  0x93   : > { %1509 = shalt.err (!%p1506_p9)
}
  0x94   : > { %p2208_p12 = scmp.ne.s32.totalorder %s2199_s16, 0  ;;  %s497_s15 = scalar_lea.vmem [#allocation12], %s1796_s17 }
  0x95   : > { %s521_s28 = sshll.u32 %s497_s15, 4  ;;  %s1510_s23 = scalar_lea.hbm %s1846_s18, 128  ;;  %s522_s28 = int_to_ptr.vmem [resolvable:$true] %s521_s28 }
  0x96   : > { %1310 = dma.hbm_to_vmem [thread:$0]  (!%p2208_p12), %s1935_s25, 128, %s464_s29, %s1811_s7  }
  0x97   : > { %p1511_p8 = scmp.ne.s32.totalorder %s1846_s18, %s1510_s23  ;;  %s1515_s20 = scalar_lea.hbm %s2169_s4, 768 }
  0x98   : > { %p1516_p10 = scmp.lt.u32.totalorder %s1846_s18, %s2169_s4  ;;  %p1517_p13 = scmp.lt.u32.totalorder %s1515_s20, %s1510_s23 }
  0x99   : > { %p1513_p4 = pnand %p1511_p8, %p1817_p2  ;;  %p1519_p7 = scmp.lt.u32.totalorder %s1510_s23, %s1846_s18 }
  0x9a   : > { %p1518_p11 = por %p1517_p13, %p1516_p10 }
  0x9b   : > { %p1514_p0 = pneg %p1513_p4 }
  0x9c   : > { %p1520_p3 = por %p1519_p7, %p1518_p11 }
  0x9e   : > { %p1521_p5 = pnand %p1520_p3, %p1514_p0 }
  0xa0   : > { %1524 = shalt.err (!%p1521_p5)
}
  0xa1   : > { %s1525_s7 = scalar_lea.vmem %s522_s28, 128  ;;  %s1672_s25 = smov [#allocation12]  }
  0xa2   : > { %p1526_p1 = scmp.ne.s32.totalorder %s522_s28, %s1525_s7  ;;  %s1530_s29 = sshll.u32 %s1672_s25, 4  ;;  %s1531_s29 = int_to_ptr.vmem [resolvable:$false] %s1530_s29 }
  0xa3   : > { %s1532_s3 = scalar_lea.vmem %s1531_s29, 256  ;;  %p1533_p8 = scmp.lt.s32.totalorder %s522_s28, %s1531_s29 }
  0xa4   : > { %p1528_p6 = pnand %p1526_p1, %p1817_p2  ;;  %p1534_p4 = scmp.lt.s32.totalorder %s1532_s3, %s1525_s7 }
  0xa6   : > { %p1529_p9 = pneg %p1528_p6  ;;  %p1535_p12 = por %p1534_p4, %p1533_p8 }
  0xa8   : > { %p1536_p10 = pnand %p1535_p12, %p1529_p9 }
  0xaa   : > { %1539 = shalt.err (!%p1536_p10)
}
  0xab   : > { %p2209_p13 = scmp.ne.s32.totalorder %s2199_s16, 0  ;;  %s1979_s15 = scalar_lea.hbm %s2170_s5, %s1786_s14 }
  0xac   : > { %s532_s23 = scalar_lea.vmem [#allocation13], %s1796_s17  ;;  %s529_s12 = scalar_lea.sflag [#allocation14], %s1783_s13 }
  0xad   : > { %1316 = dma.hbm_to_vmem [thread:$0]  (!%p2209_p13), %s1846_s18, 128, %s522_s28, %s1867_s11  }
  0xae   : > { %s556_s21 = sshll.u32 %s532_s23, 4  ;;  %s1540_s20 = scalar_lea.hbm %s1979_s15, 128  ;;  %s557_s21 = int_to_ptr.vmem [resolvable:$true] %s556_s21 }
  0xaf   : > { %p1541_p12 = scmp.ne.s32.totalorder %s1979_s15, %s1540_s20  ;;  %s1545_s11 = scalar_lea.hbm %s2170_s5, 768 }
  0xb0   : > { %p1546_p7 = scmp.lt.u32.totalorder %s1979_s15, %s2170_s5  ;;  %p1547_p3 = scmp.lt.u32.totalorder %s1545_s11, %s1540_s20 }
  0xb1   : > { %p1543_p0 = pnand %p1541_p12, %p1817_p2  ;;  %p1549_p1 = scmp.lt.u32.totalorder %s1540_s20, %s1979_s15 }
  0xb2   : > { %p1548_p5 = por %p1547_p3, %p1546_p7 }
  0xb3   : > { %p1544_p11 = pneg %p1543_p0 }
  0xb4   : > { %p1550_p6 = por %p1549_p1, %p1548_p5 }
  0xb6   : > { %p1551_p9 = pnand %p1550_p6, %p1544_p11 }
  0xb8   : > { %1554 = shalt.err (!%p1551_p9)
}
  0xb9   : > { %s1555_s13 = scalar_lea.vmem %s557_s21, 128  ;;  %s1673_s17 = smov [#allocation13]  }
  0xba   : > { %p1556_p8 = scmp.ne.s32.totalorder %s557_s21, %s1555_s13  ;;  %s1560_s6 = sshll.u32 %s1673_s17, 4  ;;  %s1561_s6 = int_to_ptr.vmem [resolvable:$false] %s1560_s6 }
  0xbb   : > { %s1562_s7 = scalar_lea.vmem %s1561_s6, 256  ;;  %p1563_p12 = scmp.lt.s32.totalorder %s557_s21, %s1561_s6 }
  0xbc   : > { %p1558_p4 = pnand %p1556_p8, %p1817_p2  ;;  %p1564_p0 = scmp.lt.s32.totalorder %s1562_s7, %s1555_s13 }
  0xbe   : > { %p1559_p10 = pneg %p1558_p4  ;;  %p1565_p13 = por %p1564_p0, %p1563_p12 }
  0xc0   : > { %p1566_p3 = pnand %p1565_p13, %p1559_p10 }
  0xc2   : > { %1569 = shalt.err (!%p1566_p3)
}
  0xc3   : > { %p2210_p7 = scmp.ne.s32.totalorder %s2199_s16, 0  ;;  %p2211_p11 = scmp.ne.s32.totalorder %s2203_s30, 0 }
  0xc4   : > { %s2003_s19 = sand.u32 (!%p2211_p11), 1, %s1648_s22   ;;  %p2212_p2 = scmp.ne.s32.totalorder (!%p2211_p11), %s2194_s9, 0 }
  0xc5   : > { %1319 = dma.hbm_to_vmem [thread:$0]  (!%p2210_p7), %s1979_s15, 128, %s557_s21, %s529_s12  }
  0xc6   : > { %565 = sbr.rel (%p2211_p11) target bundleno = 427 (0x1ab), region = 44  ;;  %s568_s29 = scalar_lea.sflag (!%p2211_p11), [#allocation5], %s2003_s19 }
  0xc7   : > { %s1286_s25 = smul.u32 (!%p2211_p11), 24, %s2003_s19 }
  0xc9   : > { %s571_s3 = scalar_lea.vmem (!%p2211_p11), [#allocation4], %s1286_s25 }
  0xcd   : > { %1623 = dma.done.wait (%p2212_p2), %s568_s29, 384  }
  0xce   : > { %1625 = vsyncadd (%p2212_p2), %s568_s29, 4294966912  ;;  %s576_s16 = sand.u32 1, %s1745_s27   ;;  %s1262_s30 = sshll.u32 %s2003_s19, 3 }
  0xcf   : > { %s577_s8 = scalar_lea.sflag [#allocation8], %s576_s16  ;;  %s580_s0 = scalar_lea.vmem [#allocation7], %s1262_s30 }
  0xd0   : > { %1627 = dma.done.wait (%p2212_p2), %s577_s8, 256  }
  0xd1   : > { %1629 = vsyncadd (%p2212_p2), %s577_s8, 4294967040  ;;  %s595_s15 = scalar_lea.sflag [#allocation11], %s576_s16  ;;  %s598_s23 = scalar_lea.vmem [#allocation10], %s1286_s25 }
  0xd2   : > { %1631 = dma.done.wait (%p2212_p2), %s595_s15, 512  }
  0xd3   : > { %1633 = vsyncadd (%p2212_p2), %s595_s15, 4294966784  ;;  %s607_s21 = scalar_lea.vmem [#allocation12], %s1262_s30  ;;  %s613_s27 = scalar_lea.sflag [#allocation14], %s2003_s19 }
  0xd4   : > { %1635 = dma.done.wait (%p2212_p2), %s613_s27, 128  }
  0xd5   : > { %1637 = vsyncadd (%p2212_p2), %s613_s27, 4294967168  ;;  %v2026_v0 = vld [vmem:[%s571_s3] sm:$0xff]  ;;  %s1674_s12 = smov 1   ;;  %v2031_v1 = vld [vmem:[%s571_s3 + $0x8] sm:$0xff]  ;;  %s1675_s9 = smov 127  }
  0xd6   : > { %766 = vrot.lane.b32.xlu0 %v2026_v0, %s1674_s12  ;;  %737 = vst [vmem:[#allocation2 + $0x8] sm:$0xff] %v2026_v0  ;;  %v2033_v2 = vld [vmem:[%s598_s23 + $0x8] sm:$0xff]  ;;  %v2035_v3 = vld [vmem:[%s598_s23] sm:$0xff]  ;;  %738 = vst [vmem:[#allocation2 + $0x10] sm:$0xff] %v2031_v1  ;;  %v754_v22 = vmul.f32 10.0, %v2026_v0  ;;  %v755_v27 = vmul.f32 10.0, %v2031_v1 }
  0xd7   : > { %901 = vrot.lane.b32.xlu1 %v2033_v2, %s1674_s12  ;;  %871 = vst [vmem:[#allocation3 + $0x10] sm:$0xff] %v2033_v2  ;;  %870 = vst [vmem:[#allocation3 + $0x8] sm:$0xff] %v2035_v3  ;;  %v735_v4 = vld [vmem:[%s580_s0] sm:$0xff]  ;;  %v868_v6 = vld [vmem:[%s607_s21] sm:$0xff]  ;;  %v887_v29 = vmul.f32 10.0, %v2035_v3  ;;  %v888_v34 = vmul.f32 10.0, %v2033_v2 }
  0xd8   : > { %v734_v5 = vld [vmem:[%s571_s3 + $0x10] sm:$0xff]  ;;  %736 = vst [vmem:[#allocation2] sm:$0xff] %v735_v4  ;;  %869 = vst [vmem:[#allocation3] sm:$0xff] %v868_v6  ;;  %v867_v7 = vld [vmem:[%s598_s23 + $0x10] sm:$0xff]  ;;  %s1266_s20 = sshll.u32 %s2003_s19, 4  ;;  %s1277_s1 = sshll.u32 %s1656_s24, 8 }
  0xd9   : > { %739 = vst [vmem:[#allocation2 + $0x18] sm:$0xff] %v734_v5  ;;  %872 = vst [vmem:[#allocation3 + $0x18] sm:$0xff] %v867_v7  ;;  %s669_s18 = scalar_lea.vmem [#allocation15], %s1266_s20  ;;  %s2213_s13 = sld [smem:[#allocation30_spill]] }
  0xda   : > { %768 = vrot.lane.b32.xlu0 %v2031_v1, %s1674_s12  ;;  %s1040_s11 = sshll.u32 %s669_s18, 4  ;;  %s1025_s6 = scalar_lea.sflag [#allocation6], %s2003_s19  ;;  %s2116_s11 = int_to_ptr.vmem [resolvable:$true] %s1040_s11 }
  0xdb   : > { %s1570_s24 = scalar_lea.vmem %s2116_s11, 256  ;;  %p2214_p5 = scmp.ne.s32.totalorder %s2195_s10, 0 }
  0xdc   : > { %p1571_p13 = scmp.ne.s32.totalorder %s2116_s11, %s1570_s24  ;;  %s1676_s7 = smov [#allocation15]  }
  0xdd   : > { %v745_v8 = vld [vmem:[#allocation2 + $0x9] sm:$0xff]  ;;  %s1574_s25 = sshll.u32 %s1676_s7, 4  ;;  %s1575_s25 = int_to_ptr.vmem [resolvable:$false] %s1574_s25 }
  0xde   : > { %899 = vrot.lane.b32.xlu0 %v2035_v3, %s1674_s12  ;;  %v743_v9 = vld [vmem:[#allocation2 + $0xf] sm:$0xff]  ;;  %v876_v17 = vld [vmem:[#allocation3 + $0xf] sm:$0xff]  ;;  %p1572_p1 = pnand %p1571_p13, %p2214_p5  ;;  %s1576_s29 = scalar_lea.vmem %s1575_s25, 512 }
  0xdf   : > { %v878_v10 = vld [vmem:[#allocation3 + $0x9] sm:$0xff]  ;;  %v742_v11 = vld [vmem:[#allocation2 + $0x7] sm:$0xff]  ;;  %s2114_s17 = scalar_lea.hbm %s2213_s13, %s1277_s1  ;;  %p1577_p9 = scmp.lt.s32.totalorder %s2116_s11, %s1575_s25 }
  0xe0   : > { %v746_v12 = vld [vmem:[#allocation2 + $0x11] sm:$0xff]  ;;  %v763_v14 = vsub.f32 %v745_v8, %v742_v11  ;;  %v879_v18 = vld [vmem:[#allocation3 + $0x11] sm:$0xff]  ;;  %v748_v19 = vadd.f32 %v745_v8, %v742_v11  ;;  %p1573_p6 = pneg %p1572_p1  ;;  %p1578_p8 = scmp.lt.s32.totalorder %s1576_s29, %s1570_s24 }
  0xe1   : > { %v875_v13 = vld [vmem:[#allocation3 + $0x7] sm:$0xff]  ;;  %v2048_v15 = vsub.f32 %v746_v12, %v743_v9  ;;  %v2060_v20 = vsub.f32 %v879_v18, %v876_v17  ;;  %v2067_v23 = vadd.f32 %v746_v12, %v743_v9  ;;  %v2082_v30 = vadd.f32 %v879_v18, %v876_v17 }
  0xe2   : > { %790 = vrot.lane.b32.xlu1 %v763_v14, %s1674_s12  ;;  %796 = vrot.lane.b32.xlu0 %v763_v14, %s1675_s9  ;;  %v2050_v16 = vsub.f32 %v878_v10, %v875_v13  ;;  %v751_v21 = vmul.f32 3.0, %v748_v19  ;;  %v2069_v24 = vadd.f32 %v878_v10, %v875_v13  ;;  %v817_v54 = vmul.f32 10.0, %v763_v14  ;;  %p1579_p4 = por %p1578_p8, %p1577_p9 }
  0xe3   : > { %v752_v26 = vmul.f32 3.0, %v2067_v23  ;;  %v885_v33 = vmul.f32 3.0, %v2082_v30  ;;  %v760_v55 = vadd.f32 %v748_v19, %v2026_v0  ;;  %v761_v13 = vadd.f32 %v2067_v23, %v2031_v1 }
  0xe4   : > { %v757_v25 = vadd.f32 %v754_v22, %v751_v21  ;;  %v884_v28 = vmul.f32 3.0, %v2069_v24  ;;  %v950_v11 = vmul.f32 10.0, %v2050_v16  ;;  %v818_v14 = vmul.f32 10.0, %v2048_v15  ;;  %p1580_p10 = pnand %p1579_p4, %p1573_p6 }
  0xe5   : > { %v758_v31 = vadd.f32 %v755_v27, %v752_v26  ;;  %v891_v35 = vadd.f32 %v888_v34, %v885_v33  ;;  %v805_v62 = vmul.f32 0.01, %v760_v55  ;;  %v893_v21 = vadd.f32 %v2069_v24, %v2035_v3 }
  0xe6   : > { %792 = vrot.lane.b32.xlu1 %v2048_v15, %s1674_s12  ;;  %923 = vrot.lane.b32.xlu0 %v2050_v16, %s1674_s12  ;;  %v890_v32 = vadd.f32 %v887_v29, %v884_v28 }
  0xe7   : > { %v938_v23 = vmul.f32 0.01, %v893_v21 }
  0xea   : > { %798 = vrot.lane.b32.xlu1 %v2048_v15, %s1675_s9  ;;  %929 = vrot.lane.b32.xlu0 %v2050_v16, %s1675_s9  ;;  %v806_v16 = vmul.f32 0.01, %v761_v13 }
  0xee   : > { %925 = vrot.lane.b32.xlu1 %v2060_v20, %s1674_s12  ;;  %772 = vrot.lane.b32.xlu0 %v2026_v0, %s1675_s9 }
  0xf2   : > { %931 = vrot.lane.b32.xlu1 %v2060_v20, %s1675_s9  ;;  %905 = vrot.lane.b32.xlu0 %v2035_v3, %s1675_s9 }
  0xf6   : > { %774 = vrot.lane.b32.xlu1 %v2031_v1, %s1675_s9  ;;  %778 = vrot.lane.b32.xlu0 %v757_v25, %s1674_s12 }
  0xfa   : > { %907 = vrot.lane.b32.xlu1 %v2033_v2, %s1675_s9  ;;  %784 = vrot.lane.b32.xlu0 %v757_v25, %s1675_s9 }
  0xfe   : > { %780 = vrot.lane.b32.xlu1 %v758_v31, %s1674_s12  ;;  %911 = vrot.lane.b32.xlu0 %v890_v32, %s1674_s12 }
 0x102   : > { %786 = vrot.lane.b32.xlu1 %v758_v31, %s1675_s9  ;;  %917 = vrot.lane.b32.xlu0 %v890_v32, %s1675_s9 }
 0x106   : > { %913 = vrot.lane.b32.xlu1 %v891_v35, %s1674_s12 }
 0x10a   : > { %919 = vrot.lane.b32.xlu1 %v891_v35, %s1675_s9 }
 0x148   : > { %v767_v36 = vpop.permute.xlu0 %766 }
 0x149   : > { %v902_v38 = vpop.permute.xlu1 %901  ;;  %v823_v48 = vadd.f32 %v767_v36, %v2026_v0 }
 0x14a   : > { %v957_v31 = vadd.f32 %v902_v38, %v2033_v2 }
 0x14c   : > { %v769_v37 = vpop.permute.xlu0 %768 }
 0x14d   : > { %v824_v63 = vadd.f32 %v769_v37, %v2031_v1 }
 0x150   : > { %v900_v39 = vpop.permute.xlu0 %899 }
 0x151   : > { %v956_v59 = vadd.f32 %v900_v39, %v2035_v3  ;;  %v951_v3 = vmul.f32 10.0, %v2060_v20 }
 0x154   : > { %v791_v40 = vpop.permute.xlu1 %790  ;;  %v797_v41 = vpop.permute.xlu0 %796 }
 0x155   : > { %v811_v49 = vadd.f32 %v797_v41, %v791_v40 }
 0x157   : > { %v814_v53 = vmul.f32 3.0, %v811_v49 }
 0x158   : > { %v793_v42 = vpop.permute.xlu1 %792  ;;  %v924_v43 = vpop.permute.xlu0 %923 }
 0x159   : > { %v820_v60 = vadd.f32 %v817_v54, %v814_v53 }
 0x15c   : > { %v799_v44 = vpop.permute.xlu1 %798  ;;  %v930_v45 = vpop.permute.xlu0 %929 }
 0x15d   : > { %v944_v61 = vadd.f32 %v930_v45, %v924_v43  ;;  %v812_v4 = vadd.f32 %v799_v44, %v793_v42  ;;  %v894_v43 = vadd.f32 %v2082_v30, %v2033_v2 }
 0x15f   : > { %v947_v0 = vmul.f32 3.0, %v944_v61  ;;  %v815_v17 = vmul.f32 3.0, %v812_v4 }
 0x160   : > { %v926_v46 = vpop.permute.xlu1 %925  ;;  %v773_v47 = vpop.permute.xlu0 %772 }
 0x161   : > { %v826_v52 = vadd.f32 %v823_v48, %v773_v47  ;;  %v953_v28 = vadd.f32 %v950_v11, %v947_v0  ;;  %v821_v32 = vadd.f32 %v818_v14, %v815_v17 }
 0x163   : > { %v829_v58 = vmul.f32 0.01, %v826_v52 }
 0x164   : > { %v932_v50 = vpop.permute.xlu1 %931  ;;  %v906_v51 = vpop.permute.xlu0 %905 }
 0x165   : > { %v832_v7 = vadd.f32 %v829_v58, %v820_v60  ;;  %v959_v8 = vadd.f32 %v956_v59, %v906_v51  ;;  %v945_v33 = vadd.f32 %v932_v50, %v926_v46  ;;  %v939_v51 = vmul.f32 0.01, %v894_v43 }
 0x167   : > { %v838_v22 = vmul.f32 %v832_v7, %v832_v7  ;;  %v962_v25 = vmul.f32 0.01, %v959_v8  ;;  %v948_v24 = vmul.f32 3.0, %v945_v33 }
 0x168   : > { %v775_v56 = vpop.permute.xlu1 %774  ;;  %v779_v57 = vpop.permute.xlu0 %778 }
 0x169   : > { %v827_v10 = vadd.f32 %v824_v63, %v775_v56  ;;  %v965_v34 = vadd.f32 %v962_v25, %v953_v28  ;;  %v954_v48 = vadd.f32 %v951_v3, %v948_v24 }
 0x16b   : > { %v830_v27 = vmul.f32 0.01, %v827_v10  ;;  %v971_v38 = vmul.f32 %v965_v34, %v965_v34 }
 0x16c   : > { %v908_v5 = vpop.permute.xlu1 %907  ;;  %v785_v6 = vpop.permute.xlu0 %784 }
 0x16d   : > { %v802_v9 = vsub.f32 %v785_v6, %v779_v57  ;;  %v833_v35 = vadd.f32 %v830_v27, %v821_v32  ;;  %v960_v36 = vadd.f32 %v957_v31, %v908_v5 }
 0x16f   : > { %v808_v12 = vadd.f32 %v805_v62, %v802_v9  ;;  %v839_v44 = vmul.f32 %v833_v35, %v833_v35  ;;  %v963_v45 = vmul.f32 0.01, %v960_v36 }
 0x170   : > { %v781_v18 = vpop.permute.xlu1 %780  ;;  %v912_v19 = vpop.permute.xlu0 %911 }
 0x171   : > { %v835_v26 = vmul.f32 %v808_v12, %v808_v12  ;;  %v966_v20 = vadd.f32 %v963_v45, %v954_v48 }
 0x173   : > { %v841_v29 = vadd.f32 %v838_v22, %v835_v26  ;;  %v972_v55 = vmul.f32 %v966_v20, %v966_v20 }
 0x174   : > { %v787_v1 = vpop.permute.xlu1 %786  ;;  %v918_v15 = vpop.permute.xlu0 %917 }
 0x175   : > { %v803_v37 = vsub.f32 %v787_v1, %v781_v18  ;;  %v935_v39 = vsub.f32 %v918_v15, %v912_v19  ;;  %1382 = vrsqrt.f32 %v841_v29  ;;  %vm846_vm0 = vcmp.eq.f32.partialorder %v841_v29, inf }
 0x176   : > { %v849_v62 = vand.u32 2147483648, %v841_v29  ;;  %vm848_vm2 = vcmp.eq.f32.partialorder %v841_v29, 0.0 }
 0x177   : > { %v809_v40 = vadd.f32 %v806_v16, %v803_v37  ;;  %v941_v41 = vadd.f32 %v938_v23, %v935_v39 }
 0x178   : > { %v914_v42 = vpop.permute.xlu1 %913 }
 0x179   : > { %v836_v46 = vmul.f32 %v809_v40, %v809_v40  ;;  %v968_v47 = vmul.f32 %v941_v41, %v941_v41 }
 0x17b   : > { %v842_v49 = vadd.f32 %v839_v44, %v836_v46  ;;  %v974_v50 = vadd.f32 %v971_v38, %v968_v47 }
 0x17c   : > { %v920_v52 = vpop.permute.xlu1 %919 }
 0x17d   : > { %v936_v53 = vsub.f32 %v920_v52, %v914_v42  ;;  %1384 = vrsqrt.f32 %v974_v50  ;;  %vm979_vm1 = vcmp.eq.f32.partialorder %v974_v50, inf  ;;  %v982_v63 = vand.u32 2147483648, %v974_v50 }
 0x17e   : > { %1386 = vrsqrt.f32 %v842_v49  ;;  %vm981_vm3 = vcmp.eq.f32.partialorder %v974_v50, 0.0  ;;  %vm853_vm4 = vcmp.eq.f32.partialorder %v842_v49, inf  ;;  %v856_v0 = vand.u32 2147483648, %v842_v49 }
 0x17f   : > { %v942_v54 = vadd.f32 %v939_v51, %v936_v53  ;;  %v1383_v57 = vpop.eup %1382  ;;  %vm855_vm6 = vcmp.eq.f32.partialorder %v842_v49, 0.0 }
 0x180   : > { %v845_v30 = vmul.f32 %v1383_v57, %v841_v29 }
 0x181   : > { %v969_v56 = vmul.f32 %v942_v54, %v942_v54 }
 0x182   : > { %v847_v60 = vsel %vm846_vm0, %v841_v29, %v845_v30 }
 0x183   : > { %v975_v2 = vadd.f32 %v972_v55, %v969_v56  ;;  %v850_v6 = vsel %vm848_vm2, %v849_v62, %v847_v60 }
 0x185   : > { %1388 = vrsqrt.f32 %v975_v2  ;;  %vm986_vm5 = vcmp.eq.f32.partialorder %v975_v2, inf  ;;  %v989_v12 = vand.u32 2147483648, %v975_v2  ;;  %vm988_vm7 = vcmp.eq.f32.partialorder %v975_v2, 0.0 }
 0x187   : > { %v1385_v58 = vpop.eup %1384 }
 0x188   : > { %v1387_v59 = vpop.eup %1386  ;;  %v978_v61 = vmul.f32 %v1385_v58, %v974_v50 }
 0x189   : > { %v852_v5 = vmul.f32 %v1387_v59, %v842_v49 }
 0x18a   : > { %v980_v4 = vsel %vm979_vm1, %v974_v50, %v978_v61 }
 0x18b   : > { %v983_v7 = vsel %vm981_vm3, %v982_v63, %v980_v4  ;;  %v854_v10 = vsel %vm853_vm4, %v842_v49, %v852_v5 }
 0x18c   : > { %v998_v8 = vsub.f32 %v850_v6, %v983_v7  ;;  %v857_v14 = vsel %vm855_vm6, %v856_v0, %v854_v10 }
 0x18e   : > { %v1001_v19 = vand.u32 2147483647, %v998_v8 }
 0x18f   : > { %v1389_v9 = vpop.eup %1388 }
 0x190   : > { %v985_v11 = vmul.f32 %v1389_v9, %v975_v2  ;;  %v1006_v22 = vmul.f32 %v1001_v19, %v1001_v19 }
 0x192   : > { %v987_v13 = vsel %vm986_vm5, %v975_v2, %v985_v11 }
 0x193   : > { %v990_v17 = vsel %vm988_vm7, %v989_v12, %v987_v13 }
 0x194   : > { %v999_v18 = vsub.f32 %v857_v14, %v990_v17 }
 0x196   : > { %v1002_v21 = vand.u32 2147483647, %v999_v18 }
 0x198   : > { %v1007_v25 = vadd.f32 %v1002_v21, %v1001_v19  ;;  %v1008_v26 = vmul.f32 %v1002_v21, %v1002_v21 }
 0x19a   : > { %v1009_v27 = vadd.f32 %v1008_v26, %v1006_v22  ;;  %1021 = vst [vmem:[%s669_s18] sm:$0xff] %v1007_v25 }
 0x19c   : > { %1267 = vst [vmem:[%s669_s18 + $0x8] sm:$0xff] %v1009_v27 }
 0x19d   : > { %1583 = shalt.err (!%p1580_p10)
}
 0x19e   : > { %s1584_s3 = scalar_lea.hbm %s2114_s17, 256  ;;  %s1588_s8 = scalar_lea.hbm %s2213_s13, 512 }
 0x19f   : > { %p1585_p12 = scmp.ne.s32.totalorder %s2114_s17, %s1584_s3  ;;  %p1589_p7 = scmp.lt.u32.totalorder %s2114_s17, %s2213_s13 }
 0x1a0   : > { %p1590_p11 = scmp.lt.u32.totalorder %s1588_s8, %s1584_s3  ;;  %p1592_p13 = scmp.lt.u32.totalorder %s1584_s3, %s2114_s17 }
 0x1a1   : > { %p1586_p0 = pnand %p1585_p12, %p2214_p5 }
 0x1a2   : > { %p1591_p2 = por %p1590_p11, %p1589_p7 }
 0x1a3   : > { %p1587_p3 = pneg %p1586_p0 }
 0x1a4   : > { %p1593_p1 = por %p1592_p13, %p1591_p2 }
 0x1a6   : > { %p1594_p6 = pnand %p1593_p1, %p1587_p3 }
 0x1a8   : > { %1597 = shalt.err (!%p1594_p6)
}
 0x1a9   : > { %s1677_s23 = smov 128   ;;  %s1678_s21 = smov 8  }
 0x1aa   : > { %1299 = dma.vmem_to_hbm [thread:$0]  (%p2214_p5), %s2116_s11, 256, %s2114_s17, %s1025_s6, %s1677_s23, %s1677_s23, %s1678_s21  }
 0x1ab PF: > { %s2215_s27 = sld [smem:[#allocation21_spill]]  ;;  %s2216_s12 = sld [smem:[#allocation26_spill]] }
 0x1ac   : > { %p2218_p8 = scmp.ge.s32.totalorder %s1664_s26, 2 }
 0x1b1   : > { %s1055_s9 = sand.u32 1, %s2215_s27   ;;  %p2217_p9 = scmp.ne.s32.totalorder %s2216_s12, 0 }
 0x1b2   : > { %s1056_s20 = scalar_lea.sflag [#allocation6], %s1055_s9 }
 0x1b3   : > { %p1321_p4 = pnand %p2218_p8, %p2217_p9 }
 0x1b5   : > { %1639 = dma.done.wait (!%p1321_p4), %s1056_s20, 256  }
 0x1b6   : > { %1641 = vsyncadd (!%p1321_p4), %s1056_s20, 4294967040  ;;  %s31_s26 = sadd.s32 1, %s1664_s26   ;;  %s2219_s1 = sld [smem:[#allocation22_spill]] }
 0x1b7   : > { %p28_p10 = scmp.ge.s32.totalorder %s31_s26, 4   ;;  %s2220_s23 = sld [smem:[#allocation25_spill]] }
 0x1b8   : > { %s2221_s24 = sld [smem:[#allocation23_spill]]  ;;  %s2222_s25 = sld [smem:[#allocation24_spill]] }
 0x1b9   : > { %s2223_s21 = smov %s1648_s22  ;;  %30 = sbr.rel (!%p28_p10) target bundleno = 17 (0x11), region = 151 }
 0x1bc   : > { %s2224_s22 = smov %s2219_s1 }
 0x1c0   :  { %1061 = vsyncpa [#allocation5], 1 }
 0x1c1   :  { %1063 = vsyncpa [#allocation5 + $0x1], 1 }
 0x1c2   :  { %1064 = vsyncpa [#allocation8], 1 }
 0x1c3   :  { %1066 = vsyncpa [#allocation8 + $0x1], 1 }
 0x1c4   :  { %1067 = vsyncpa [#allocation11], 1 }
 0x1c5   :  { %1069 = vsyncpa [#allocation11 + $0x1], 1 }
 0x1c6   :  { %1070 = vsyncpa [#allocation14], 1 }
 0x1c7   :  { %1072 = vsyncpa [#allocation14 + $0x1], 1 }
 0x1c8   :  { %1073 = vsyncpa [#allocation6], 1 }
 0x1c9   :  { %1075 = vsyncpa [#allocation6 + $0x1], 1 }

</bundles_post_ra>
